<compile_context>
chip_gen: v6e
topology: v6e:2x2x1
jax: 0.10.0
libtpu: 0.0.40
codegen_flags: <defaults>
</compile_context>

<pallas_src>
import functools

import jax
import jax.numpy as jnp
from jax.experimental import pallas as pl
from jax.experimental.pallas import tpu as pltpu


def _round_up(a: int, b: int) -> int:
    return ((a + b - 1) // b) * b


def _fractional_encoder_kernel(x_ref, pe_ref, out_ref, *, resolution, log10):
    # x_ref  : [TM, 1]        f32 fractional amounts
    # pe_ref : [RES_PAD, HALF] f32 (rows >= resolution are zero padding)
    # out_ref: [TM, HALF]     f32
    x = x_ref[...]
    if log10:
        lg = jnp.log2(x)
        x = 0.0025 * lg * lg
        x = jnp.minimum(x, 1.0)
    x = jnp.maximum(x, 1.0 / resolution)

    idx = jnp.round(x * resolution).astype(jnp.int32) - 1          # [TM, 1]
    # torch would index-error on out-of-range; we clamp to the valid table.
    idx = jnp.clip(idx, 0, resolution - 1)

    pe = pe_ref[...]
    tm = x.shape[0]
    res_pad = pe.shape[0]

    # Embedding gather as a one-hot matmul on the MXU (exact for 0/1 weights).
    iota = jax.lax.broadcasted_iota(jnp.int32, (tm, res_pad), 1)
    onehot = (iota == idx).astype(pe.dtype)                         # [TM, RES_PAD]
    out = jnp.dot(onehot, pe, preferred_element_type=jnp.float32)   # [TM, HALF]
    out_ref[...] = out.astype(out_ref.dtype)


def make_pe_table(d_model: int, resolution: int = 100, dtype=jnp.float32):
    """Replicates the torch buffer construction of FractionalEncoder.pe."""
    half = d_model // 2
    pos = jnp.arange(resolution, dtype=jnp.float32)[:, None]        # [res, 1]
    col = jnp.arange(half, dtype=jnp.float32)[None, :]               # [1, half]
    angles = pos / jnp.power(jnp.float32(50.0), 2.0 * col / half)    # [res, half]
    even = (jnp.arange(half)[None, :] % 2) == 0
    pe = jnp.where(even, jnp.sin(angles), jnp.cos(angles))
    return pe.astype(dtype)


def fractional_encoder_forward(x, pe, *, resolution=100, log10=False, tm=512):
    """x: [B, T] fractional amounts; pe: [resolution, half]. Returns [B, T, half]."""
    B, T = x.shape
    res, half = pe.shape
    assert res == resolution
    N = B * T

    # Tile sizing: large tiles amortize per-grid-step overhead; pad ragged N.
    tm_eff = min(tm, _round_up(N, 8))
    n_tiles = (N + tm_eff - 1) // tm_eff
    n_pad = n_tiles * tm_eff

    x_col = x.reshape(N).astype(jnp.float32)
    if n_pad != N:
        x_col = jnp.concatenate(
            [x_col, jnp.full((n_pad - N,), 1.0, jnp.float32)])
    x_col = x_col.reshape(n_pad, 1)

    # Pad table rows to a multiple of 128 -> single clean MXU contraction dim.
    res_pad = _round_up(res, 128)
    pe_pad = jnp.zeros((res_pad, half), pe.dtype).at[:res, :].set(pe)

    kernel = functools.partial(
        _fractional_encoder_kernel, resolution=resolution, log10=log10)

    out = pl.pallas_call(
        kernel,
        out_shape=jax.ShapeDtypeStruct((n_pad, half), jnp.float32),
        grid_spec=pl.GridSpec(
            grid=(n_tiles,),
            in_specs=[
                pl.BlockSpec((tm_eff, 1), lambda i: (i, 0)),        # token tile
                pl.BlockSpec((res_pad, half), lambda i: (0, 0)),    # resident pe table
            ],
            out_specs=pl.BlockSpec((tm_eff, half), lambda i: (i, 0)),
        ),
        compiler_params=pltpu.CompilerParams(
            dimension_semantics=("parallel",)),                     # v7x: 2 TCs share tiles
    )(x_col, pe_pad)

    return out[:N].reshape(B, T, half)


def _reference_forward(x, pe, *, resolution=100, log10=False):
    xx = x.astype(jnp.float32)
    if log10:
        xx = 0.0025 * jnp.square(jnp.log2(xx))
        xx = jnp.minimum(xx, 1.0)
    xx = jnp.maximum(xx, 1.0 / resolution)
    idx = jnp.round(xx * resolution).astype(jnp.int32) - 1
    idx = jnp.clip(idx, 0, resolution - 1)
    return jnp.take(pe, idx, axis=0)


if __name__ == "__main__":
    # Small shapes consistent with the module: batch=2, seq=8, d_model=64.
    B, T = 2, 8
    d_model = 64          # -> half = 32 encoding dims per token
    resolution = 100

    key = jax.random.PRNGKey(0)
    # Fractional amounts in (0, 1], like element fractions of a formula.
    x = jax.random.uniform(key, (B, T), jnp.float32, minval=0.01, maxval=1.0)

    pe = make_pe_table(d_model, resolution)

    for log10 in (False, True):
        out = fractional_encoder_forward(
            x, pe, resolution=resolution, log10=log10)
        out = jax.block_until_ready(out)
        ref = _reference_forward(x, pe, resolution=resolution, log10=log10)
        assert out.shape == (B, T, d_model // 2)
        assert jnp.allclose(out, ref, atol=1e-6, rtol=1e-6), f"mismatch log10={log10}"

    print("KERNEL_OK")
</pallas_src>

<mosaic_0001>
module attributes {stable_mosaic.version = 11 : i64} {
  func.func @_fractional_encoder_kernel(%arg0: i32, %arg1: memref<16x1xf32, #tpu.memory_space<vmem>>, %arg2: memref<128x32xf32, #tpu.memory_space<vmem>>, %arg3: memref<16x32xf32, #tpu.memory_space<vmem>>) attributes {dimension_semantics = [#tpu.dimension_semantics<parallel>], iteration_bounds = array<i64: 1>, scalar_prefetch = 0 : i64, scratch_operands = 0 : i64, tpu.core_type = #tpu.core_type<tc>, window_params = [{transform_indices = @transform_0, window_bounds = array<i64: 16, 1>}, {pipeline_mode = #tpu.pipeline_mode<synchronous>, transform_indices = @transform_1, window_bounds = array<i64: 128, 32>}, {transform_indices = @transform_2, window_bounds = array<i64: 16, 32>}]} {
    %c0 = arith.constant 0 : index
    %c0_0 = arith.constant 0 : index
    %0 = vector.load %arg1[%c0, %c0_0] : memref<16x1xf32, #tpu.memory_space<vmem>>, vector<16x1xf32>
    %cst = arith.constant 0.00999999977 : f32
    %1 = vector.broadcast %cst : f32 to vector<16x1xf32>
    %2 = arith.maximumf %0, %1 : vector<16x1xf32>
    %cst_1 = arith.constant 1.000000e+02 : f32
    %3 = vector.broadcast %cst_1 : f32 to vector<16x1xf32>
    %4 = arith.mulf %2, %3 : vector<16x1xf32>
    %5 = math.roundeven %4 : vector<16x1xf32>
    %6 = arith.fptosi %5 : vector<16x1xf32> to vector<16x1xi32>
    %c1_i32 = arith.constant 1 : i32
    %7 = vector.broadcast %c1_i32 : i32 to vector<16x1xi32>
    %8 = arith.subi %6, %7 : vector<16x1xi32>
    %c0_i32 = arith.constant 0 : i32
    %c99_i32 = arith.constant 99 : i32
    %9 = vector.broadcast %c0_i32 : i32 to vector<16x1xi32>
    %10 = arith.maxsi %9, %8 : vector<16x1xi32>
    %11 = vector.broadcast %c99_i32 : i32 to vector<16x1xi32>
    %12 = arith.minsi %11, %10 : vector<16x1xi32>
    %c0_2 = arith.constant 0 : index
    %c0_3 = arith.constant 0 : index
    %13 = vector.load %arg2[%c0_2, %c0_3] : memref<128x32xf32, #tpu.memory_space<vmem>>, vector<128x32xf32>
    %14 = tpu.iota {dimensions = array<i32: 1>} : vector<16x128xi32>
    %15 = vector.broadcast %12 : vector<16x1xi32> to vector<16x128xi32>
    %16 = arith.cmpi eq, %14, %15 : vector<16x128xi32>
    %17 = arith.extui %16 : vector<16x128xi1> to vector<16x128xi32>
    %18 = arith.sitofp %17 : vector<16x128xi32> to vector<16x128xf32>
    %cst_4 = arith.constant dense<0.000000e+00> : vector<16x32xf32>
    %19 = tpu.matmul %18, %13, %cst_4 {dimension_numbers = #tpu.dot_dimension_numbers<[1], [0], [0], [1], [0, 0, 1, 1], [], []>} : vector<16x128xf32>, vector<128x32xf32>, vector<16x32xf32> -> vector<16x32xf32>
    %c0_5 = arith.constant 0 : index
    %c0_6 = arith.constant 0 : index
    %20 = vector.load %arg3[%c0_5, %c0_6] : memref<16x32xf32, #tpu.memory_space<vmem>>, vector<16x32xf32>
    tpu.vector_store %arg3[%c0_5, %c0_6], %19 {strides = array<i32>} : memref<16x32xf32, #tpu.memory_space<vmem>>, vector<16x32xf32>,
    return
  }
  func.func @transform_0(%arg0: i32) -> (i32, i32) {
    %c0_i32 = arith.constant 0 : i32
    %c0_i32_0 = arith.constant 0 : i32
    return %arg0, %c0_i32 : i32, i32
  }
  func.func @transform_1(%arg0: i32) -> (i32, i32) {
    %c0_i32 = arith.constant 0 : i32
    %c0_i32_0 = arith.constant 0 : i32
    %c0_i32_1 = arith.constant 0 : i32
    return %c0_i32, %c0_i32_0 : i32, i32
  }
  func.func @transform_2(%arg0: i32) -> (i32, i32) {
    %c0_i32 = arith.constant 0 : i32
    %c0_i32_0 = arith.constant 0 : i32
    return %arg0, %c0_i32 : i32, i32
  }
}

</mosaic_0001>

<bundles_post_ra>
// kernel: tpu_custom_call.1
= control target key start
LH: loop header
LB: loop body
LE: loop exit
PB: predicated region body
PF: predicated region fallthrough
CT: control target
= control target key end

     0   :  { %v247_v3 = vmov 0   ;;  %s324_s0 = inlined_call_operand.vmem [shape: f32[16,1], index: 0, kind: input, shape index: {}]   ;;  %s325_s1 = inlined_call_operand.vmem [shape: f32[128,32], index: 1, kind: input, shape index: {}]   ;;  %s326_s2 = inlined_call_operand.hbm [shape: f32[16,32], index: 2, kind: output, shape index: {}]  }
   0x1   :  { %v12_v0 = vld [vmem:[%s324_s0] sm:$0xff]  ;;  %v13_v1 = vld [vmem:[%s324_s0 + $0x8] sm:$0xff]  ;;  %v45_v2 = vld [vmem:[%s325_s1 + $0x78] sm:$0xff]  ;;  %224 = vset.pattern.permute.xlu0 %v247_v3 }
   0x2   :  { %v14_v4 = vmax.f32 %v12_v0, 0.01  ;;  %v15_v5 = vmax.f32 %v13_v1, 0.01  ;;  %178 = vmatprep.subr.mxu0 %v45_v2  ;;  %v44_v6 = vld [vmem:[%s325_s1 + $0x70] sm:$0xff]  ;;  %v43_v7 = vld [vmem:[%s325_s1 + $0x68] sm:$0xff] }
   0x3   :  { %179 = vmatpush3.msra.mxu0 %v45_v2  ;;  %v42_v10 = vld [vmem:[%s325_s1 + $0x60] sm:$0xff] }
   0x4   :  { %v16_v8 = vmul.f32 100.0, %v14_v4  ;;  %v17_v9 = vmul.f32 100.0, %v15_v5  ;;  %180 = vmatprep.subr.mxu0 %v44_v6 }
   0x5   :  { %181 = vmatpush3.msra.mxu0 %v44_v6 }
   0x6   :  { %v215_v11 = vcvt.f32.s32 %v16_v8  ;;  %v218_v12 = vcvt.f32.s32 %v17_v9  ;;  %182 = vmatprep.subr.mxu0 %v43_v7 }
   0x7   :  { %7 = vsyncpa [#allocation3], 0  ;;  %183 = vmatpush3.msra.mxu0 %v43_v7  ;;  %v41_v13 = vld [vmem:[%s325_s1 + $0x58] sm:$0xff]  ;;  %v40_v16 = vld [vmem:[%s325_s1 + $0x50] sm:$0xff]  ;;  %v46_v31 = vlaneseq  ;;  %v248_v34 = vmov 1.0   ;;  %s249_s16 = smov [#allocation2]  }
   0x8   :  { %v154_v14 = vadd.s32 4294967295, %v215_v11  ;;  %v155_v15 = vadd.s32 4294967295, %v218_v12  ;;  %184 = vmatprep.subr.mxu0 %v42_v10  ;;  %v39_v19 = vld [vmem:[%s325_s1 + $0x48] sm:$0xff]  ;;  %v38_v21 = vld [vmem:[%s325_s1 + $0x40] sm:$0xff]  ;;  %v37_v23 = vld [vmem:[%s325_s1 + $0x38] sm:$0xff]  ;;  %s143_s17 = sshll.u32 %s249_s16, 4  ;;  %s144_s17 = int_to_ptr.vmem [resolvable:$true] %s143_s17 }
   0x9   :  { %185 = vmatpush3.msra.mxu0 %v42_v10  ;;  %v36_v24 = vld [vmem:[%s325_s1 + $0x30] sm:$0xff]  ;;  %v35_v25 = vld [vmem:[%s325_s1 + $0x28] sm:$0xff]  ;;  %v34_v26 = vld [vmem:[%s325_s1 + $0x20] sm:$0xff]  ;;  %v47_v32 = vand.u32 127, %v46_v31  ;;  %vm135_vm6 = vcmask 261120   ;;  %p230_p1 = scmp.lt.s32.totalorder %s144_s17, %s144_s17 }
   0xa   :  { %vm22_vm0 = vcmp.gt.s32.totalorder %v154_v14, 0  ;;  %vm24_vm1 = vcmp.gt.s32.totalorder %v155_v15, 0  ;;  %186 = vmatprep.subr.mxu0 %v41_v13  ;;  %v33_v27 = vld [vmem:[%s325_s1 + $0x18] sm:$0xff]  ;;  %v32_v28 = vld [vmem:[%s325_s1 + $0x10] sm:$0xff]  ;;  %v31_v29 = vld [vmem:[%s325_s1 + $0x8] sm:$0xff] }
   0xb   :  { %v23_v17 = vsel %vm22_vm0, %v154_v14, 0  ;;  %v25_v18 = vsel %vm24_vm1, %v155_v15, 0  ;;  %187 = vmatpush3.msra.mxu0 %v41_v13  ;;  %v30_v30 = vld [vmem:[%s325_s1] sm:$0xff]  ;;  %s225_s1 = scalar_lea.vmem %s144_s17, 256 }
   0xc   :  { %vm26_vm2 = vcmp.lt.s32.totalorder %v23_v17, 99  ;;  %vm28_vm3 = vcmp.lt.s32.totalorder %v25_v18, 99  ;;  %188 = vmatprep.subr.mxu0 %v40_v16  ;;  %p226_p0 = scmp.ne.s32.totalorder %s144_s17, %s225_s1  ;;  %p231_p2 = scmp.lt.s32.totalorder %s225_s1, %s225_s1 }
   0xd   :  { %v27_v20 = vsel %vm26_vm2, %v23_v17, 99  ;;  %189 = vmatpush3.msra.mxu0 %v40_v16  ;;  %v29_v22 = vsel %vm28_vm3, %v25_v18, 99 }
   0xe   :  { %49 = vperm.xlu0 %224, %v27_v20   ;;  %190 = vmatprep.subr.mxu0 %v39_v19  ;;  %p232_p3 = por %p231_p2, %p230_p1 }
   0xf   :  { %191 = vmatpush3.msra.mxu0 %v39_v19 }
  0x10   :  { %192 = vmatprep.subr.mxu0 %v38_v21  ;;  %p233_p4 = pnand %p232_p3, %p226_p0 }
  0x11   :  { %193 = vmatpush3.msra.mxu0 %v38_v21 }
  0x12   :  { %52 = vperm.xlu0 %224, %v29_v22   ;;  %194 = vmatprep.subr.mxu0 %v37_v23 }
  0x13   :  { %195 = vmatpush3.msra.mxu0 %v37_v23 }
  0x14   :  { %196 = vmatprep.subr.mxu0 %v36_v24 }
  0x15   :  { %197 = vmatpush3.msra.mxu0 %v36_v24 }
  0x16   :  { %198 = vmatprep.subr.mxu0 %v35_v25 }
  0x17   :  { %199 = vmatpush3.msra.mxu0 %v35_v25 }
  0x18   :  { %200 = vmatprep.subr.mxu0 %v34_v26 }
  0x19   :  { %201 = vmatpush3.msra.mxu0 %v34_v26 }
  0x1a   :  { %202 = vmatprep.subr.mxu0 %v33_v27 }
  0x1b   :  { %203 = vmatpush3.msra.mxu0 %v33_v27 }
  0x1c   :  { %204 = vmatprep.subr.mxu0 %v32_v28 }
  0x1d   :  { %205 = vmatpush3.msra.mxu0 %v32_v28 }
  0x1e   :  { %206 = vmatprep.subr.mxu0 %v31_v29 }
  0x1f   :  { %207 = vmatpush3.msra.mxu0 %v31_v29 }
  0x20   :  { %208 = vmatprep.subr.mxu0 %v30_v30 }
  0x21   :  { %209 = vmatpush3.msra.mxu0 %v30_v30 }
  0x89   :  { %v50_v33 = vpop.permute.xlu0 %49 }
  0x8a   :  { %vm54_vm4 = vcmp.eq.s32.totalorder %v47_v32, %v50_v33 }
  0x8b   :  { %210 = vmatprep.mubr.msk.f32.mxu0 %vm54_vm4, %v248_v34 }
  0x8d   :  { %v53_v35 = vpop.permute.xlu0 %52 }
  0x8e   :  { %vm55_vm5 = vcmp.eq.s32.totalorder %v47_v32, %v53_v35 }
  0x8f   :  { %211 = vmatmul.mubr.msk.f32.vlgmr.msra.gmra.mxu0 %vm55_vm5, %v248_v34 }
 0x14f   :  { %v212_v36 = vpop.f32.mrf.mxu0 }
 0x150   :  { %137 = vst.msk [vmem:[#allocation2 + $0x8] sm:$0xff] %vm135_vm6, %v212_v36 }
 0x151   :  { %v126_v37 = vpop.f32.mrf.mxu0 }
 0x152   :  { %136 = vst.msk [vmem:[#allocation2] sm:$0xff] %vm135_vm6, %v126_v37 }
 0x153   :  { %236 = shalt.err (!%p233_p4)
}
 0x154   :  { %s250_s18 = smov 128   ;;  %s251_s0 = smov 8  }
 0x155   :  { %149 = dma.vmem_to_hbm [thread:$0]  %s144_s17, 256, %s326_s2, [#allocation3], %s250_s18, %s250_s18, %s251_s0  }
 0x156   :  { %245 = dma.done.wait [#allocation3], 256  }
 0x157   :  { %246 = vsyncadd [#allocation3], 4294967040 }
 0x158   :  { %153 = vsyncpa [#allocation3], 1 }

</bundles_post_ra>
